<compile_context>
chip_gen: v5e
topology: v5e:2x2
jax: 0.10.0
libtpu: 0.0.40
codegen_flags: <defaults>
</compile_context>

<pallas_src>
import math

import jax
import jax.numpy as jnp
from jax.experimental import pallas as pl
from jax.experimental.pallas import tpu as pltpu


KP = 128  # lane-padded projection width (multiple of 128 lanes)


# -----------------------------------------------------------------------------
# Fused head kernel: AvgPool3d pathway + RoIAlign pathway + projection + softmax.
# One grid step per batch element; the whole per-batch working set is VMEM-resident.
# -----------------------------------------------------------------------------
def _fused_head_kernel(x0_ref, x1_ref, wroi_ref, w0_ref, w1_ref, b_ref, o_ref):
    # Pathway 0: AvgPool3d over the full (T, H, W) window -> (1, C0).
    f0 = jnp.mean(x0_ref[...], axis=-1)

    # Pathway 1: mask/temporally-combined RoIAlign interpolation as a single MXU matmul
    # (C1, T*HW) @ (T*HW, P), then MaxPool2d over the P spatial bins -> (1, C1).
    roi = jnp.einsum("bct,btp->bcp", x1_ref[...], wroi_ref[...],
                     preferred_element_type=jnp.float32)
    f1 = jnp.max(roi, axis=-1)

    # Projection split along the channel concat (f0 | f1) + bias (class dim padded to 128).
    logits = (jnp.dot(f0, w0_ref[...], preferred_element_type=jnp.float32)
              + jnp.dot(f1, w1_ref[...], preferred_element_type=jnp.float32)
              + b_ref[...])

    # Softmax over classes (padded lanes carry a -1e30 bias -> exp underflows to 0).
    mx = jnp.max(logits, axis=-1, keepdims=True)
    e = jnp.exp(logits - mx)
    inv = pl.reciprocal(jnp.sum(e, axis=-1, keepdims=True), approx=True)
    probs = e * inv
    o_ref[...] = probs.reshape(o_ref.shape).astype(o_ref.dtype)


def fused_head(x0f, x1f, wroi, w0p, w1p, bp, num_classes):
    B, C0, THW0 = x0f.shape
    _, C1, THW1 = x1f.shape
    P = wroi.shape[-1]
    out = pl.pallas_call(
        _fused_head_kernel,
        out_shape=jax.ShapeDtypeStruct((B, 1, KP), jnp.float32),
        grid=(B,),
        in_specs=[
            pl.BlockSpec((1, C0, THW0), lambda b: (b, 0, 0)),   # pathway-0 features
            pl.BlockSpec((1, C1, THW1), lambda b: (b, 0, 0)),   # pathway-1 features
            pl.BlockSpec((1, THW1, P), lambda b: (b, 0, 0)),    # combined interp weights
            pl.BlockSpec((C0, KP), lambda b: (0, 0)),           # projection weights (path 0)
            pl.BlockSpec((C1, KP), lambda b: (0, 0)),           # projection weights (path 1)
            pl.BlockSpec((1, KP), lambda b: (0, 0)),            # projection bias (padded)
        ],
        out_specs=pl.BlockSpec((1, 1, KP), lambda b: (b, 0, 0)),
        compiler_params=pltpu.CompilerParams(
            dimension_semantics=("parallel",)),                 # megacore split over B (v7x)
    )(x0f, x1f, wroi, w0p, w1p, bp)
    return out[:, 0, :num_classes]


# -----------------------------------------------------------------------------
# JAX glue: exact torchvision RoIAlign (sampling_ratio=0, aligned=True) expressed as a
# per-ROI interpolation weight matrix of shape (R, Ph*Pw, H*W), built by 4-corner
# scatter-adds (no (R,Ph,Pw,MG,MG,HW) one-hot intermediate).
# -----------------------------------------------------------------------------
def roi_align_weight_matrix(boxes, H, W, pooled_h, pooled_w, spatial_scale,
                            aligned=True, max_grid=4):
    R = boxes.shape[0]
    offset = 0.5 if aligned else 0.0
    x1 = boxes[:, 1] * spatial_scale - offset
    y1 = boxes[:, 2] * spatial_scale - offset
    x2 = boxes[:, 3] * spatial_scale - offset
    y2 = boxes[:, 4] * spatial_scale - offset
    roi_w = x2 - x1
    roi_h = y2 - y1
    if not aligned:
        roi_w = jnp.maximum(roi_w, 1.0)
        roi_h = jnp.maximum(roi_h, 1.0)
    bin_h = roi_h / pooled_h
    bin_w = roi_w / pooled_w
    # sampling_ratio == 0 -> adaptive grid (bounded by max_grid; large enough for boxes here)
    grid_h = jnp.minimum(jnp.ceil(roi_h / pooled_h), float(max_grid))
    grid_w = jnp.minimum(jnp.ceil(roi_w / pooled_w), float(max_grid))
    count = jnp.maximum(grid_h * grid_w, 1.0)
    gh_safe = jnp.maximum(grid_h, 1.0)
    gw_safe = jnp.maximum(grid_w, 1.0)

    ph = jnp.arange(pooled_h, dtype=jnp.float32)
    pw = jnp.arange(pooled_w, dtype=jnp.float32)
    iy = jnp.arange(max_grid, dtype=jnp.float32)
    ix = jnp.arange(max_grid, dtype=jnp.float32)

    y = (y1[:, None, None] + ph[None, :, None] * bin_h[:, None, None]
         + (iy[None, None, :] + 0.5) * bin_h[:, None, None] / gh_safe[:, None, None])
    x = (x1[:, None, None] + pw[None, :, None] * bin_w[:, None, None]
         + (ix[None, None, :] + 0.5) * bin_w[:, None, None] / gw_safe[:, None, None])

    valid = ((iy[None, :, None] < grid_h[:, None, None]) &
             (ix[None, None, :] < grid_w[:, None, None]))            # (R, MG, MG)

    yb = y[:, :, None, :, None]
    xb = x[:, None, :, None, :]
    yb, xb = jnp.broadcast_arrays(yb, xb)                            # (R, Ph, Pw, MG, MG)
    vb = valid[:, None, None, :, :]

    in_bounds = (yb >= -1.0) & (yb <= H) & (xb >= -1.0) & (xb <= W)
    yc = jnp.maximum(yb, 0.0)
    xc = jnp.maximum(xb, 0.0)
    y_low = jnp.floor(yc).astype(jnp.int32)
    x_low = jnp.floor(xc).astype(jnp.int32)
    y_hi_clip = y_low >= H - 1
    x_hi_clip = x_low >= W - 1
    y_low = jnp.where(y_hi_clip, H - 1, y_low)
    x_low = jnp.where(x_hi_clip, W - 1, x_low)
    y_high = jnp.where(y_hi_clip, H - 1, y_low + 1)
    x_high = jnp.where(x_hi_clip, W - 1, x_low + 1)
    yc = jnp.where(y_hi_clip, y_low.astype(yc.dtype), yc)
    xc = jnp.where(x_hi_clip, x_low.astype(xc.dtype), xc)
    ly = yc - y_low
    lx = xc - x_low
    hy = 1.0 - ly
    hx = 1.0 - lx

    scale = jnp.where(in_bounds & vb, 1.0, 0.0) / count[:, None, None, None, None]

    HW = H * W
    P = pooled_h * pooled_w
    r_idx = jnp.broadcast_to(
        jnp.arange(R, dtype=jnp.int32)[:, None, None, None, None], yb.shape).reshape(-1)
    p_flat = (jnp.arange(pooled_h, dtype=jnp.int32)[:, None] * pooled_w
              + jnp.arange(pooled_w, dtype=jnp.int32)[None, :])
    p_idx = jnp.broadcast_to(p_flat[None, :, :, None, None], yb.shape).reshape(-1)

    wmat = jnp.zeros((R, P, HW), dtype=jnp.float32)

    def add_corner(wm, yi, xi, wgt):
        idx = (yi * W + xi).reshape(-1)
        val = (wgt * scale).reshape(-1)
        return wm.at[r_idx, p_idx, idx].add(val)

    wmat = add_corner(wmat, y_low, x_low, hy * hx)
    wmat = add_corner(wmat, y_low, x_high, hy * lx)
    wmat = add_corner(wmat, y_high, x_low, ly * hx)
    wmat = add_corner(wmat, y_high, x_high, ly * lx)
    return wmat                                                      # (R, P, HW)


def build_roi_combined_weights(boxes, masks, B, T, H, W, resolution, scale_factor):
    """Mask-weighted, 1/(msum+eps)-normalized, temporally-averaged combination of the
    per-ROI interpolation matrices -> one (T*HW, P) weight matrix per batch element.
    Linear in the interp weights, so numerically equivalent to the reference op order."""
    R = boxes.shape[0]
    N = R // (B * T)
    Ph, Pw = resolution
    P, HW = Ph * Pw, H * W

    wmat = roi_align_weight_matrix(boxes, H, W, Ph, Pw, 1.0 / scale_factor, aligned=True)
    masks = masks.astype(jnp.float32)

    r = jnp.arange(R, dtype=jnp.int32)
    pos_b = r // (T * N)                    # positional (b, t, n) grouping, as in torch
    pos_t = (r // N) % T
    msum = masks.reshape(B, T, N).sum(axis=-1)                  # (B, T) mask denominator
    norm = masks / (float(T) * (msum[pos_b, pos_t] + 1e-8))     # mask / ((msum+eps) * T)
    w_scaled = wmat * norm[:, None, None]                       # (R, P, HW)

    # Honor boxes[:, 0] (frame index into the flattened B*T batch) WITHOUT duplicating the
    # feature maps: scatter each ROI's weights into its frame slot.
    # TODO(synk): assumes every ROI samples a frame of its own batch element (the standard
    # layout batch_idx = b*T + t); cross-batch boxes would need a full-feature contraction.
    frame_local = boxes[:, 0].astype(jnp.int32) - pos_b * T
    w_frames = jnp.zeros((B, T, P, HW), jnp.float32).at[pos_b, frame_local].add(w_scaled)
    return jnp.transpose(w_frames, (0, 1, 3, 2)).reshape(B, T * HW, P)


def head_forward(inputs, bboxes_list, masks_list, params, cfg):
    assert cfg["num_pathways"] == 2 and cfg["roi_type"] == [[0], [1]]
    x0, x1 = inputs
    assert x0.ndim == 5 and x1.ndim == 5
    B, C0, T0, H0, W0 = x0.shape
    _, C1, T1, H1, W1 = x1.shape
    boxes, masks = bboxes_list[0], masks_list[0]

    # Pathway 0: AvgPool3d([T,H,W]) == mean over flattened (T*H*W), done in-kernel.
    x0f = x0.reshape(B, C0, T0 * H0 * W0)
    # Pathway 1: features flattened over (T, H, W); interp weights combined per batch.
    x1f = x1.reshape(B, C1, T1 * H1 * W1)
    wroi = build_roi_combined_weights(boxes, masks, B, T1, H1, W1,
                                      cfg["resolution"][1], cfg["scale_factor"][1])

    # Projection: split along the channel concat (pathway0 | pathway1) and pad the class
    # dim to 128 lanes; padded logits get a -1e30 bias so the in-kernel softmax zeroes them.
    K = params["w"].shape[0]
    wT = params["w"].T.astype(jnp.float32)                      # (D, K), D = C0 + C1
    w0p = jnp.zeros((C0, KP), jnp.float32).at[:, :K].set(wT[:C0])
    w1p = jnp.zeros((C1, KP), jnp.float32).at[:, :K].set(wT[C0:])
    bp = jnp.full((1, KP), -1e30, jnp.float32).at[0, :K].set(params["b"].astype(jnp.float32))

    # eval mode: projection -> softmax(dim=4) -> mean over (1,1,1) spatial dims (identity)
    return fused_head(x0f, x1f, wroi, w0p, w1p, bp, K)           # (B, K)


if __name__ == "__main__":
    key = jax.random.PRNGKey(0)
    B, T, H, W, N = 2, 4, 8, 8, 3
    dim_in = [4, 8]
    num_classes = 6
    cfg = dict(num_pathways=2, roi_type=[[0], [1]],
               resolution=[(4, 4), (4, 4)], scale_factor=[16, 16])

    k0, k1, kb, km, kw_, kb_ = jax.random.split(key, 6)
    x0 = jax.random.normal(k0, (B, dim_in[0], T, H, W), dtype=jnp.float32)
    x1 = jax.random.normal(k1, (B, dim_in[1], T, H, W), dtype=jnp.float32)

    R = B * T * N
    kx1, ky1, kwd, kht = jax.random.split(kb, 4)
    bx1 = jax.random.uniform(kx1, (R,), minval=0.0, maxval=90.0)
    by1 = jax.random.uniform(ky1, (R,), minval=0.0, maxval=90.0)
    bw = jax.random.uniform(kwd, (R,), minval=8.0, maxval=36.0)
    bh = jax.random.uniform(kht, (R,), minval=8.0, maxval=36.0)
    bx2 = jnp.minimum(bx1 + bw, float(W * 16) - 1.0)
    by2 = jnp.minimum(by1 + bh, float(H * 16) - 1.0)
    batch_idx = jnp.repeat(jnp.arange(B * T, dtype=jnp.float32), N)
    boxes = jnp.stack([batch_idx, bx1, by1, bx2, by2], axis=1)          # (R, 5)
    masks = (jax.random.uniform(km, (R,)) > 0.3).astype(jnp.float32)    # (R,)

    D = sum(dim_in)
    limit = 1.0 / math.sqrt(D)
    w_lin = jax.random.uniform(kw_, (num_classes, D), minval=-limit, maxval=limit)
    b_lin = jax.random.uniform(kb_, (num_classes,), minval=-limit, maxval=limit)
    params = {"w": w_lin, "b": b_lin}

    out = head_forward([x0, x1], [boxes], [masks], params, cfg)
    out = jax.block_until_ready(out)
    assert out.shape == (B, num_classes)
    assert bool(jnp.all(jnp.isfinite(out)))
    # softmax rows must sum to ~1 (loose tolerance: approx reciprocal on the EUP)
    assert bool(jnp.all(jnp.abs(jnp.sum(out, axis=-1) - 1.0) < 5e-2))
    print("KERNEL_OK")
</pallas_src>

<mosaic_0001>
module attributes {stable_mosaic.version = 11 : i64} {
  func.func @_fused_head_kernel(%arg0: i32, %arg1: memref<1x4x256xf32, #tpu.memory_space<vmem>>, %arg2: memref<1x8x256xf32, #tpu.memory_space<vmem>>, %arg3: memref<1x256x16xf32, #tpu.memory_space<vmem>>, %arg4: memref<4x128xf32, #tpu.memory_space<vmem>>, %arg5: memref<8x128xf32, #tpu.memory_space<vmem>>, %arg6: memref<1x128xf32, #tpu.memory_space<vmem>>, %arg7: memref<1x1x128xf32, #tpu.memory_space<vmem>>) attributes {dimension_semantics = [#tpu.dimension_semantics<parallel>], iteration_bounds = array<i64: 2>, scalar_prefetch = 0 : i64, scratch_operands = 0 : i64, tpu.core_type = #tpu.core_type<tc>, window_params = [{transform_indices = @transform_0, window_bounds = array<i64: 1, 4, 256>}, {transform_indices = @transform_1, window_bounds = array<i64: 1, 8, 256>}, {transform_indices = @transform_2, window_bounds = array<i64: 1, 256, 16>}, {pipeline_mode = #tpu.pipeline_mode<synchronous>, transform_indices = @transform_3, window_bounds = array<i64: 4, 128>}, {pipeline_mode = #tpu.pipeline_mode<synchronous>, transform_indices = @transform_4, window_bounds = array<i64: 8, 128>}, {pipeline_mode = #tpu.pipeline_mode<synchronous>, transform_indices = @transform_5, window_bounds = array<i64: 1, 128>}, {transform_indices = @transform_6, window_bounds = array<i64: 1, 1, 128>}]} {
    %c0 = arith.constant 0 : index
    %c0_0 = arith.constant 0 : index
    %c0_1 = arith.constant 0 : index
    %0 = vector.load %arg1[%c0, %c0_0, %c0_1] : memref<1x4x256xf32, #tpu.memory_space<vmem>>, vector<1x4x256xf32>
    %cst = arith.constant dense<0.000000e+00> : vector<1x4xf32>
    %1 = vector.multi_reduction <add>, %0, %cst [2] : vector<1x4x256xf32> to vector<1x4xf32>
    %cst_2 = arith.constant 2.560000e+02 : f32
    %2 = vector.broadcast %cst_2 : f32 to vector<1x4xf32>
    %3 = arith.divf %1, %2 : vector<1x4xf32>
    %c0_3 = arith.constant 0 : index
    %c0_4 = arith.constant 0 : index
    %c0_5 = arith.constant 0 : index
    %4 = vector.load %arg2[%c0_3, %c0_4, %c0_5] : memref<1x8x256xf32, #tpu.memory_space<vmem>>, vector<1x8x256xf32>
    %c0_6 = arith.constant 0 : index
    %c0_7 = arith.constant 0 : index
    %c0_8 = arith.constant 0 : index
    %5 = vector.load %arg3[%c0_6, %c0_7, %c0_8] : memref<1x256x16xf32, #tpu.memory_space<vmem>>, vector<1x256x16xf32>
    "tpu.trace_start"() <{level = 10 : i32, message = "bct,btp->bcp"}> : () -> ()
    %cst_9 = arith.constant dense<0.000000e+00> : vector<1x8x16xf32>
    %6 = tpu.matmul %4, %5, %cst_9 {dimension_numbers = #tpu.dot_dimension_numbers<[2], [1], [1], [2], [0, 0, 0, 1, 1, 2], [0], [0]>} : vector<1x8x256xf32>, vector<1x256x16xf32>, vector<1x8x16xf32> -> vector<1x8x16xf32>
    "tpu.trace_stop"() : () -> ()
    %cst_10 = arith.constant dense<0xFF800000> : vector<1x8xf32>
    %7 = vector.multi_reduction <maximumf>, %6, %cst_10 [2] : vector<1x8x16xf32> to vector<1x8xf32>
    %c0_11 = arith.constant 0 : index
    %c0_12 = arith.constant 0 : index
    %8 = vector.load %arg4[%c0_11, %c0_12] : memref<4x128xf32, #tpu.memory_space<vmem>>, vector<4x128xf32>
    %cst_13 = arith.constant dense<0.000000e+00> : vector<1x128xf32>
    %9 = tpu.matmul %3, %8, %cst_13 {dimension_numbers = #tpu.dot_dimension_numbers<[1], [0], [0], [1], [0, 0, 1, 1], [], []>} : vector<1x4xf32>, vector<4x128xf32>, vector<1x128xf32> -> vector<1x128xf32>
    %c0_14 = arith.constant 0 : index
    %c0_15 = arith.constant 0 : index
    %10 = vector.load %arg5[%c0_14, %c0_15] : memref<8x128xf32, #tpu.memory_space<vmem>>, vector<8x128xf32>
    %cst_16 = arith.constant dense<0.000000e+00> : vector<1x128xf32>
    %11 = tpu.matmul %7, %10, %cst_16 {dimension_numbers = #tpu.dot_dimension_numbers<[1], [0], [0], [1], [0, 0, 1, 1], [], []>} : vector<1x8xf32>, vector<8x128xf32>, vector<1x128xf32> -> vector<1x128xf32>
    %12 = arith.addf %9, %11 : vector<1x128xf32>
    %c0_17 = arith.constant 0 : index
    %c0_18 = arith.constant 0 : index
    %13 = vector.load %arg6[%c0_17, %c0_18] : memref<1x128xf32, #tpu.memory_space<vmem>>, vector<1x128xf32>
    %14 = arith.addf %12, %13 : vector<1x128xf32>
    %cst_19 = arith.constant dense<0xFF800000> : vector<1xf32>
    %15 = vector.multi_reduction <maximumf>, %14, %cst_19 [1] : vector<1x128xf32> to vector<1xf32>
    %16 = vector.shape_cast %15 : vector<1xf32> to vector<1x1xf32>
    %17 = vector.broadcast %16 : vector<1x1xf32> to vector<1x128xf32>
    %18 = arith.subf %14, %17 : vector<1x128xf32>
    %19 = math.exp %18 : vector<1x128xf32>
    %cst_20 = arith.constant dense<0.000000e+00> : vector<1xf32>
    %20 = vector.multi_reduction <add>, %19, %cst_20 [1] : vector<1x128xf32> to vector<1xf32>
    %21 = vector.shape_cast %20 : vector<1xf32> to vector<1x1xf32>
    %22 = tpu.reciprocal %21 {approx = true} : vector<1x1xf32> -> vector<1x1xf32>
    %23 = vector.broadcast %22 : vector<1x1xf32> to vector<1x128xf32>
    %24 = arith.mulf %19, %23 : vector<1x128xf32>
    %25 = vector.shape_cast %24 : vector<1x128xf32> to vector<1x1x128xf32>
    %c0_21 = arith.constant 0 : index
    %c0_22 = arith.constant 0 : index
    %c0_23 = arith.constant 0 : index
    %26 = vector.load %arg7[%c0_21, %c0_22, %c0_23] : memref<1x1x128xf32, #tpu.memory_space<vmem>>, vector<1x1x128xf32>
    tpu.vector_store %arg7[%c0_21, %c0_22, %c0_23], %25 {strides = array<i32>} : memref<1x1x128xf32, #tpu.memory_space<vmem>>, vector<1x1x128xf32>,
    return
  }
  func.func @transform_0(%arg0: i32) -> (i32, i32, i32) {
    %c0_i32 = arith.constant 0 : i32
    %c0_i32_0 = arith.constant 0 : i32
    %c0_i32_1 = arith.constant 0 : i32
    return %arg0, %c0_i32, %c0_i32_0 : i32, i32, i32
  }
  func.func @transform_1(%arg0: i32) -> (i32, i32, i32) {
    %c0_i32 = arith.constant 0 : i32
    %c0_i32_0 = arith.constant 0 : i32
    %c0_i32_1 = arith.constant 0 : i32
    return %arg0, %c0_i32, %c0_i32_0 : i32, i32, i32
  }
  func.func @transform_2(%arg0: i32) -> (i32, i32, i32) {
    %c0_i32 = arith.constant 0 : i32
    %c0_i32_0 = arith.constant 0 : i32
    %c0_i32_1 = arith.constant 0 : i32
    return %arg0, %c0_i32, %c0_i32_0 : i32, i32, i32
  }
  func.func @transform_3(%arg0: i32) -> (i32, i32) {
    %c0_i32 = arith.constant 0 : i32
    %c0_i32_0 = arith.constant 0 : i32
    %c0_i32_1 = arith.constant 0 : i32
    return %c0_i32, %c0_i32_0 : i32, i32
  }
  func.func @transform_4(%arg0: i32) -> (i32, i32) {
    %c0_i32 = arith.constant 0 : i32
    %c0_i32_0 = arith.constant 0 : i32
    %c0_i32_1 = arith.constant 0 : i32
    return %c0_i32, %c0_i32_0 : i32, i32
  }
  func.func @transform_5(%arg0: i32) -> (i32, i32) {
    %c0_i32 = arith.constant 0 : i32
    %c0_i32_0 = arith.constant 0 : i32
    %c0_i32_1 = arith.constant 0 : i32
    return %c0_i32, %c0_i32_0 : i32, i32
  }
  func.func @transform_6(%arg0: i32) -> (i32, i32, i32) {
    %c0_i32 = arith.constant 0 : i32
    %c0_i32_0 = arith.constant 0 : i32
    %c0_i32_1 = arith.constant 0 : i32
    return %arg0, %c0_i32, %c0_i32_0 : i32, i32, i32
  }
}

</mosaic_0001>

<bundles_post_ra>
// kernel: tpu_custom_call.1
= control target key start
LH: loop header
LB: loop body
LE: loop exit
PB: predicated region body
PF: predicated region fallthrough
CT: control target
= control target key end

     0   :  { %11 = vsyncpa [#allocation3], 0  ;;  %s858_s0 = inlined_call_operand.vmem [shape: f32[2,4,256], index: 0, kind: input, shape index: {}]   ;;  %s859_s1 = inlined_call_operand.vmem [shape: f32[2,8,256], index: 1, kind: input, shape index: {}]   ;;  %s860_s2 = inlined_call_operand.vmem [shape: f32[2,256,16], index: 2, kind: input, shape index: {}]   ;;  %s861_s3 = inlined_call_operand.vmem [shape: f32[4,128], index: 3, kind: input, shape index: {}]   ;;  %s862_s4 = inlined_call_operand.vmem [shape: f32[8,128], index: 4, kind: input, shape index: {}]   ;;  %s863_s5 = inlined_call_operand.vmem [shape: f32[1,128], index: 5, kind: input, shape index: {}]   ;;  %s864_s6 = inlined_call_operand.hbm [shape: f32[2,1,128], index: 6, kind: output, shape index: {}]  }
   0x1   :  { %13 = vsyncpa [#allocation3 + $0x1], 0  ;;  %s716_s21 = smov 0   ;;  %s718_s22 = smov 0  }
   0x2   :  { %s720_s23 = smov 0   ;;  %s722_s24 = smov 0  }
   0x3 LB: > { %s737_s25 = sadd.s32 4294967295, %s678_s24   ;;  %s552_s26 = sadd.s32 4294967294, %s678_s24   ;;  %s678_s24 = sphi %s722_s24, %s870_s24   ;;  %s674_s23 = sphi %s720_s23, %s869_s23   ;;  %s670_s22 = sphi %s718_s22, %s868_s22   ;;  %s666_s21 = sphi %s716_s21, %s867_s21  }
   0x4   : > { %s741_s27 = sadd.s32 1, %s678_s24   ;;  %s167_s28 = sadd.s32 1, %s674_s23 }
   0x5   : > { %s164_s29 = ssub.s32 %s678_s24, %s741_s27  ;;  %p177_p0 = scmp.ne.s32.totalorder %s674_s23, %s670_s22 }
   0x6   : > { %p165_p1 = scmp.eq.s32.totalorder %s164_s29, 0  ;;  %p178_p2 = scmp.eq.s32.totalorder %s737_s25, 1 }
   0x7   : > { %p183_p3 = scmp.ne.s32.totalorder %s670_s22, %s666_s21  ;;  %p184_p4 = scmp.eq.s32.totalorder %s552_s26, 1 }
   0x8   : > { %s752_s30 = scalar_select %p165_p1, %s674_s23, %s167_s28  }
   0x9   : > { %p754_p5 = por %p178_p2, %p177_p0  ;;  %p758_p6 = por %p184_p4, %p183_p3 }
   0xa   : > { %p555_p7 = scmp.ge.s32.totalorder %s678_s24, 1  ;;  %p235_p8 = scmp.lt.s32.totalorder %s678_s24, 3 }
   0xc   : > { %p236_p9 = pnand %p555_p7, %p235_p8 }
   0xd   : > { %p274_p10 = scmp.lt.s32.totalorder (!%p236_p9), %s737_s25, 1  ;;  %s469_s16 = scalar_lea.hbm (!%p236_p9), %s864_s6, %s737_s25 }
   0xe   : > { %239 = sbr.rel (%p236_p9) target bundleno = 696 (0x2b8), region = 44  ;;  %s473_s19 = sshll.u32 (!%p236_p9), %s469_s16, 4  ;;  %s474_s19 = int_to_ptr.hbm [resolvable:$true] %s473_s19 }
  0x13   : > { %s766_s9 = scalar_select %p274_p10, %s737_s25, 1  ;;  %vm296_vm0 = vcmask 1043456   ;;  %v388_v40 = vld [vmem:[%s861_s3] sm:$0xf]  ;;  %v680_v41 = vmov 256.0   ;;  %v391_v45 = vlaneseq  ;;  %vm419_vm2 = vcmask 31744  }
  0x14   : > { %610 = vrcp.f32 %v680_v41  ;;  %563 = vmatpush.msk.msra.mxu3 %vm296_vm0, %v388_v40  ;;  %vm384_vm3 = vcmask 130048   ;;  %v389_v57 = vld [vmem:[%s862_s4] sm:$0xff]  ;;  %vm394_vm4 = vcmask 64512   ;;  %vm447_vm5 = vcmask 1040384   ;;  %s636_s25 = scalar_lea.hbm %s864_s6, 2 }
  0x15   : > { %s569_s10 = sshll.u32 %s766_s9, 8  ;;  %s567_s14 = sshll.u32 %s766_s9, 3  ;;  %v392_v49 = vand.u32 127, %v391_v45  ;;  %412 = vmatpush.msra.mxu2 %v389_v57  ;;  %v445_v62 = vld [vmem:[%s863_s5] sm:$0x1] }
  0x16   : > { %s772_s13 = scalar_lea.vmem %s860_s2, %s569_s10  ;;  %s278_s17 = scalar_lea.vmem %s858_s0, %s567_s14 }
  0x17   : > { %v327_v0 = vld [vmem:[%s772_s13 + $0x78] sm:$0xff]  ;;  %v326_v2 = vld [vmem:[%s772_s13 + $0x70] sm:$0xff]  ;;  %v325_v4 = vld [vmem:[%s772_s13 + $0x68] sm:$0xff]  ;;  %s568_s18 = sshll.u32 %s766_s9, 4 }
  0x18   : > { %v343_v1 = vld [vmem:[%s772_s13 + $0xf8] sm:$0xff]  ;;  %344 = vmatpush.msra.mxu0 %v327_v0  ;;  %v342_v3 = vld [vmem:[%s772_s13 + $0xf0] sm:$0xff]  ;;  %v341_v5 = vld [vmem:[%s772_s13 + $0xe8] sm:$0xff]  ;;  %s283_s26 = scalar_lea.vmem %s859_s1, %s568_s18 }
  0x19   : > { %364 = vmatpush.msra.mxu1 %v343_v1  ;;  %v324_v6 = vld [vmem:[%s772_s13 + $0x60] sm:$0xff]  ;;  %v323_v8 = vld [vmem:[%s772_s13 + $0x58] sm:$0xff]  ;;  %v322_v10 = vld [vmem:[%s772_s13 + $0x50] sm:$0xff] }
  0x1a   : > { %345 = vmatpush.msra.mxu0 %v326_v2  ;;  %v340_v7 = vld [vmem:[%s772_s13 + $0xe0] sm:$0xff]  ;;  %v339_v9 = vld [vmem:[%s772_s13 + $0xd8] sm:$0xff]  ;;  %v338_v11 = vld [vmem:[%s772_s13 + $0xd0] sm:$0xff]  ;;  %v611_v42 = vpop.eup %610 }
  0x1b   : > { %365 = vmatpush.msra.mxu1 %v342_v3  ;;  %v321_v12 = vld [vmem:[%s772_s13 + $0x48] sm:$0xff]  ;;  %v289_v14 = vld [vmem:[%s278_s17] sm:$0xff]  ;;  %v319_v17 = vld [vmem:[%s772_s13 + $0x38] sm:$0xff]  ;;  %v303_v43 = vmul.f32 256.0, %v611_v42  ;;  %vm307_vm1 = vweird.f32 %v611_v42 }
  0x1c   : > { %346 = vmatpush.msra.mxu0 %v325_v4  ;;  %v337_v13 = vld [vmem:[%s772_s13 + $0xc8] sm:$0xff]  ;;  %v320_v15 = vld [vmem:[%s772_s13 + $0x40] sm:$0xff]  ;;  %291 = vst [vmem:[#allocation1] ss:$2 sm:$0xff] %v289_v14  ;;  %v335_v18 = vld [vmem:[%s772_s13 + $0xb8] sm:$0xff] }
  0x1d   : > { %366 = vmatpush.msra.mxu1 %v341_v5  ;;  %v336_v16 = vld [vmem:[%s772_s13 + $0xc0] sm:$0xff]  ;;  %v318_v19 = vld [vmem:[%s772_s13 + $0x30] sm:$0xff]  ;;  %v317_v21 = vld [vmem:[%s772_s13 + $0x28] sm:$0xff]  ;;  %v304_v44 = vsub.f32 1.0, %v303_v43 }
  0x1e   : > { %347 = vmatpush.msra.mxu0 %v324_v6  ;;  %v334_v20 = vld [vmem:[%s772_s13 + $0xb0] sm:$0xff]  ;;  %v333_v22 = vld [vmem:[%s772_s13 + $0xa8] sm:$0xff]  ;;  %v316_v25 = vld [vmem:[%s772_s13 + $0x20] sm:$0xff] }
  0x1f   : > { %367 = vmatpush.msra.mxu1 %v340_v7  ;;  %v332_v26 = vld [vmem:[%s772_s13 + $0xa0] sm:$0xff]  ;;  %v315_v30 = vld [vmem:[%s772_s13 + $0x18] sm:$0xff]  ;;  %v314_v32 = vld [vmem:[%s772_s13 + $0x10] sm:$0xff]  ;;  %v305_v46 = vmul.f32 %v611_v42, %v304_v44 }
  0x20   : > { %348 = vmatpush.msra.mxu0 %v323_v8  ;;  %v331_v31 = vld [vmem:[%s772_s13 + $0x98] sm:$0xff]  ;;  %v330_v33 = vld [vmem:[%s772_s13 + $0x90] sm:$0xff]  ;;  %v313_v34 = vld [vmem:[%s772_s13 + $0x8] sm:$0xff] }
  0x21   : > { %368 = vmatpush.msra.mxu1 %v339_v9  ;;  %v329_v35 = vld [vmem:[%s772_s13 + $0x88] sm:$0xff]  ;;  %v312_v36 = vld [vmem:[%s772_s13] sm:$0xff]  ;;  %v306_v47 = vadd.f32 %v611_v42, %v305_v46 }
  0x22   : > { %349 = vmatpush.msra.mxu0 %v322_v10  ;;  %v328_v37 = vld [vmem:[%s772_s13 + $0x80] sm:$0xff]  ;;  %v311_v39 = vld [vmem:[%s283_s26 + $0x8] sm:$0xff]  ;;  %s272_s13 = sand.u32 1, %s670_s22  }
  0x23   : > { %369 = vmatpush.msra.mxu1 %v338_v11  ;;  %v292_v23 = vld.sshfl [vmem:[#allocation1] sm:$0xff pattern:$0x75316420]  ;;  %v293_v24 = vld.sshfl [vmem:[#allocation1 + $0x8] sm:$0xff pattern:$0x75316420]  ;;  %v308_v50 = vsel %vm307_vm1, %v611_v42, %v306_v47 }
  0x24   : > { %350 = vmatpush.msra.mxu0 %v321_v12  ;;  %v297_v27 = vsel %vm296_vm0, %v292_v23, 0.0  ;;  %v298_v28 = vsel %vm296_vm0, %v293_v24, 0.0  ;;  %v310_v38 = vld [vmem:[%s283_s26] sm:$0xff]  ;;  %s273_s17 = scalar_lea.vmem [#allocation2], %s272_s13  ;;  %s461_s20 = scalar_lea.sflag [#allocation3], %s272_s13 }
  0x25   : > { %370 = vmatpush.msra.mxu1 %v337_v13  ;;  %v299_v29 = vadd.f32 %v298_v28, %v297_v27  ;;  %s471_s18 = sshll.u32 %s273_s17, 4  ;;  %s630_s26 = sshra.s32 %s474_s19, 4  ;;  %s472_s18 = int_to_ptr.vmem [resolvable:$true] %s471_s18  ;;  %s631_s26 = int_to_ptr.hbm [resolvable:$true] %s630_s26 }
  0x26   : > { %351 = vmatpush.msra.mxu0 %v320_v15  ;;  %s632_s28 = scalar_lea.hbm %s631_s26, 1  ;;  %p637_p0 = scmp.lt.s32.totalorder %s631_s26, %s864_s6 }
  0x27   : > { %371 = vmatpush.msra.mxu1 %v336_v16  ;;  %300 = vadd.xlane.f32.xlu0 %v299_v29  ;;  %p633_p11 = scmp.ne.s32.totalorder %s631_s26, %s632_s28  ;;  %p638_p1 = scmp.lt.s32.totalorder %s636_s25, %s632_s28 }
  0x28   : > { %352 = vmatpush.msra.mxu0 %v319_v17 }
  0x29   : > { %372 = vmatpush.msra.mxu1 %v335_v18  ;;  %p634_p12 = pnand %p633_p11, %p754_p5  ;;  %p639_p2 = por %p638_p1, %p637_p0 }
  0x2a   : > { %353 = vmatpush.msra.mxu0 %v318_v19 }
  0x2b   : > { %373 = vmatpush.msra.mxu1 %v334_v20  ;;  %p635_p13 = pneg %p634_p12 }
  0x2c   : > { %354 = vmatpush.msra.mxu0 %v317_v21 }
  0x2d   : > { %374 = vmatpush.msra.mxu1 %v333_v22  ;;  %p640_p3 = pnand %p639_p2, %p635_p13 }
  0x2e   : > { %355 = vmatpush.msra.mxu0 %v316_v25 }
  0x2f   : > { %375 = vmatpush.msra.mxu1 %v332_v26 }
  0x30   : > { %356 = vmatpush.msra.mxu0 %v315_v30 }
  0x31   : > { %376 = vmatpush.msra.mxu1 %v331_v31 }
  0x32   : > { %357 = vmatpush.msra.mxu0 %v314_v32 }
  0x33   : > { %377 = vmatpush.msra.mxu1 %v330_v33 }
  0x34   : > { %358 = vmatpush.msra.mxu0 %v313_v34 }
  0x35   : > { %378 = vmatpush.msra.mxu1 %v329_v35 }
  0x36   : > { %359 = vmatpush.msra.mxu0 %v312_v36 }
  0x37   : > { %379 = vmatpush.msra.mxu1 %v328_v37  ;;  %360 = vmatmul.f32.vlgmr.msra.gmra.mxu0 %v310_v38 }
  0x38   : > { %380 = vmatmul.f32.vlgmr.msra.gmra.mxu1 %v311_v39 }
  0x9a   : > { %v301_v48 = vpop.xlane.xlu0 %300 }
  0x9b   : > { %v309_v51 = vmul.f32 %v308_v50, %v301_v48 }
  0x9d   : > { %v418_v52 = vperm.slane %v309_v51, %v392_v49 }
  0x9f   : > { %564 = vmatmul.msk.f32.vlgmr.msra.gmra.mxu3 %vm419_vm2, %v418_v52 }
  0xb4   : > { %v361_v53 = vpop.f32.mrf.mxu0 }
  0xb5   : > { %v381_v54 = vpop.f32.mrf.mxu1 }
  0xb6   : > { %v382_v55 = vadd.f32 %v381_v54, %v361_v53 }
  0xb8   : > { %v385_v56 = vsel %vm384_vm3, %v382_v55, -inf }
  0xb9   : > { %386 = vmax.xlane.f32.xlu0 %v385_v56 }
 0x122   : > { %v442_v60 = vpop.f32.mrf.mxu3 }
 0x12c   : > { %v387_v58 = vpop.xlane.xlu0 %386 }
 0x12d   : > { %v393_v59 = vperm.slane %v387_v58, %v392_v49 }
 0x12f   : > { %562 = vmatmul.msk.f32.vlgmr.msra.gmra.mxu2 %vm394_vm4, %v393_v59 }
 0x1b2   : > { %v414_v61 = vpop.f32.mrf.mxu2 }
 0x1b3   : > { %v443_v63 = vadd.f32 %v442_v60, %v414_v61 }
 0x1b5   : > { %v446_v0 = vadd.f32 %v445_v62, %v443_v63 }
 0x1b7   : > { %v448_v1 = vsel %vm447_vm5, %v446_v0, -inf }
 0x1b8   : > { %449 = vmax.xlane.f32.xlu1 %v448_v1 }
 0x22b   : > { %v450_v2 = vpop.xlane.xlu1 %449 }
 0x22c   : > { %v451_v3 = vsub.f32 %v446_v0, %v450_v2 }
 0x22e   : > { %v452_v4 = vmul.f32 1.442695, %v451_v3 }
 0x230   : > { %612 = vpow2.f32 %v452_v4 }
 0x236   : > { %v613_v5 = vpop.eup %612 }
 0x237   : > { %v454_v6 = vsel %vm447_vm5, %v613_v5, 0.0 }
 0x238   : > { %455 = vadd.xlane.f32.xlu1 %v454_v6 }
 0x2ab   : > { %v456_v7 = vpop.xlane.xlu1 %455 }
 0x2ac   : > { %614 = vrcp.f32 %v456_v7 }
 0x2b2   : > { %v615_v8 = vpop.eup %614 }
 0x2b3   : > { %v458_v9 = vmul.f32 %v615_v8, %v613_v5 }
 0x2b5   : > { %459 = vst [vmem:[%s273_s17] sm:$0x1] %v458_v9 }
 0x2b6   : > { %643 = shalt.err (!%p640_p3)
}
 0x2b7   : > { %570 = dma.vmem_to_hbm [thread:$0]  (%p754_p5), %s472_s18, 16, %s474_s19, %s461_s20  }
 0x2b8 PF: > { %p576_p4 = scmp.ge.s32.totalorder %s678_s24, 2  ;;  %s485_s12 = sand.u32 1, %s666_s21  }
 0x2b9   : > { %s486_s13 = scalar_lea.sflag [#allocation3], %s485_s12 }
 0x2ba   : > { %p573_p7 = pnand %p576_p4, %p758_p6 }
 0x2bc   : > { %p574_p8 = pneg %p573_p7 }
 0x2be   : > { %661 = dma.done.wait (%p574_p8), %s486_s13, 16  }
 0x2bf   : > { %663 = vsyncadd (%p574_p8), %s486_s13, 4294967280  ;;  %p16_p9 = scmp.ge.s32.totalorder %s741_s27, 4   ;;  %s867_s21 = smov %s670_s22 }
 0x2c0   : > { %s868_s22 = smov %s674_s23  ;;  %s869_s23 = smov %s752_s30 }
 0x2c1   : > { %s870_s24 = smov %s741_s27  ;;  %18 = sbr.rel (!%p16_p9) target bundleno = 3 (0x3), region = 85 }
 0x2c6   :  { %491 = vsyncpa [#allocation3], 1 }
 0x2c7   :  { %493 = vsyncpa [#allocation3 + $0x1], 1 }

</bundles_post_ra>
